<compile_context>
chip_gen: v5e
topology: v5e:2x2
jax: 0.10.0
libtpu: 0.0.40
codegen_flags: <defaults>
</compile_context>

<pallas_src>
import jax
import jax.numpy as jnp
import numpy as np
from jax.experimental import pallas as pl
from jax.experimental.pallas import tpu as pltpu

OUTPUT_RANGE = (0.8, 5.2)

# Resident-table (one-hot MXU gather) variant only works while the folded tables
# fit comfortably in per-core VMEM alongside the pipeline buffers.
_MAX_RESIDENT_TABLE_BYTES = 48 * 1024 * 1024


def _mf_sigmoid_range_kernel(uidx_ref, midx_ref,      # (1, 1, TB) int32 index blocks
                             utab_ref, itab_ref,      # (E+2, n_rows) resident tables
                             out_ref):                # (1, 1, TB) output block
    lo, hi = OUTPUT_RANGE
    uidx = uidx_ref[0]                                # (1, TB) int32, batch on lanes
    midx = midx_ref[0]                                # (1, TB)
    n_users = utab_ref.shape[1]
    n_items = itab_ref.shape[1]
    tb = uidx.shape[-1]
    tab_dtype = utab_ref.dtype

    # One-hot row gather via MXU (small-table resident variant).
    row_u = jax.lax.broadcasted_iota(jnp.int32, (n_users, tb), 0)
    row_i = jax.lax.broadcasted_iota(jnp.int32, (n_items, tb), 0)
    oh_u = (row_u == uidx).astype(tab_dtype)          # (n_users, TB)
    oh_i = (row_i == midx).astype(tab_dtype)          # (n_items, TB)
    ue = jnp.dot(utab_ref[...], oh_u, preferred_element_type=jnp.float32)  # (E+2, TB)
    ie = jnp.dot(itab_ref[...], oh_i, preferred_element_type=jnp.float32)  # (E+2, TB)

    # Extended rows are [emb, bias_u, 1] and [emb, 1, bias_i], so this single
    # multiply + sublane reduce equals dot(emb_u, emb_i) + bias_u + bias_i.
    rating = jnp.sum(ue * ie, axis=0, keepdims=True)  # (1, TB)  VPU mul + XLU reduce
    rating = jax.nn.sigmoid(rating)                   # EUP
    out_ref[0] = (rating * (hi - lo) + lo).astype(out_ref.dtype)  # lane-dense store


def prepare_mf_tables(user_emb, item_emb, user_bias, item_bias,
                      *, table_dtype=jnp.float32):
    """Fold biases into the embedding rows (hoisted out of the per-call path).

    user row = [emb, bias_u, 1], item row = [emb, 1, bias_i]; returned transposed
    as (E+2, n_rows) so the kernel's one-hot gather lands batch on the lane axis.
    Precompute these once and reuse them across calls.
    """
    n_users = user_emb.shape[0]
    n_items = item_emb.shape[0]
    ones_u = jnp.ones((n_users, 1), jnp.float32)
    ones_i = jnp.ones((n_items, 1), jnp.float32)
    user_tab = jnp.concatenate(
        [user_emb.astype(jnp.float32), user_bias.astype(jnp.float32), ones_u],
        axis=1).T
    item_tab = jnp.concatenate(
        [item_emb.astype(jnp.float32), ones_i, item_bias.astype(jnp.float32)],
        axis=1).T
    return user_tab.astype(table_dtype), item_tab.astype(table_dtype)


def mfnet_sigmoid_range_from_tables(user_idx, item_idx, user_tab, item_tab,
                                    *, block_batch=1024):
    """Forward pass given precomputed folded tables. Returns float32 ratings [batch]."""
    batch = user_idx.shape[0]
    ext, n_users = user_tab.shape          # ext = E + 2
    _, n_items = item_tab.shape
    tab_itemsize = jnp.dtype(user_tab.dtype).itemsize

    table_bytes = ext * (n_users + n_items) * tab_itemsize
    if table_bytes > _MAX_RESIDENT_TABLE_BYTES:
        # TODO(synk): implement the scalar-prefetch manual-DMA row-gather path
        # (tables in pl.ANY + double-buffered VMEM scratch) for large tables.
        raise ValueError(
            f"Folded embedding tables ({table_bytes} bytes) exceed the VMEM-resident "
            "limit; the DMA-gather fallback is not implemented yet.")

    # Lane-dense batch blocks: multiple of 128, capped at the 128-rounded batch so
    # tiny batches aren't padded all the way up to block_batch.
    block_batch = max(128, (block_batch // 128) * 128)
    tb = min(block_batch, pl.cdiv(batch, 128) * 128)
    num_blocks = pl.cdiv(batch, tb)
    padded = num_blocks * tb

    def prep_idx(idx):
        idx = idx.astype(jnp.int32)
        idx = jnp.pad(idx, (0, padded - batch))       # pad tail with index 0 (valid row)
        return idx.reshape(num_blocks, 1, tb)

    uidx = prep_idx(user_idx)
    midx = prep_idx(item_idx)

    # VMEM budget: single-buffered tables + double-buffered idx/out blocks + in-kernel
    # intermediates (one-hots, gathered rows), with ~50% headroom. Clamped to sane bounds.
    working_bytes = (
        table_bytes                                   # resident tables, Buffered(1)
        + 2 * 2 * tb * 4                              # 2 idx inputs x 2 buffers (int32)
        + 2 * tb * 4                                  # output block x 2 buffers (f32)
        + (n_users + n_items) * tb * tab_itemsize     # one-hot operands
        + 2 * ext * tb * 4)                           # gathered rows (f32 accumulators)
    vmem_limit = int(min(128 * 1024 * 1024,
                         max(16 * 1024 * 1024, working_bytes * 3 // 2 + (2 << 20))))

    out = pl.pallas_call(
        _mf_sigmoid_range_kernel,
        out_shape=jax.ShapeDtypeStruct((num_blocks, 1, tb), jnp.float32),
        grid_spec=pltpu.PrefetchScalarGridSpec(
            num_scalar_prefetch=0,
            grid=(num_blocks,),
            in_specs=[
                pl.BlockSpec((1, 1, tb), lambda i: (i, 0, 0)),          # user idx block
                pl.BlockSpec((1, 1, tb), lambda i: (i, 0, 0)),          # item idx block
                pl.BlockSpec((ext, n_users), lambda i: (0, 0),          # resident table
                             pipeline_mode=pl.Buffered(1)),
                pl.BlockSpec((ext, n_items), lambda i: (0, 0),          # resident table
                             pipeline_mode=pl.Buffered(1)),
            ],
            out_specs=pl.BlockSpec((1, 1, tb), lambda i: (i, 0, 0)),
        ),
        compiler_params=pltpu.CompilerParams(
            dimension_semantics=("parallel",),
            vmem_limit_bytes=vmem_limit),
    )(uidx, midx, user_tab, item_tab)

    return out.reshape(padded)[:batch]


def mfnet_sigmoid_range(user_idx, item_idx, user_emb, item_emb, user_bias,
                        item_bias, *, block_batch=1024, table_dtype=jnp.float32):
    """Convenience wrapper: fold tables then run the kernel (prefer precomputing
    the tables with prepare_mf_tables() once and calling *_from_tables directly)."""
    user_tab, item_tab = prepare_mf_tables(
        user_emb, item_emb, user_bias, item_bias, table_dtype=table_dtype)
    return mfnet_sigmoid_range_from_tables(
        user_idx, item_idx, user_tab, item_tab, block_batch=block_batch)


def _reference(user_idx, item_idx, user_emb, item_emb, user_bias, item_bias):
    u = user_emb[user_idx]
    it = item_emb[item_idx]
    r = jnp.sum(u * it, axis=1) + user_bias[user_idx, 0] + item_bias[item_idx, 0]
    r = jax.nn.sigmoid(r)
    lo, hi = OUTPUT_RANGE
    return r * (hi - lo) + lo


if __name__ == "__main__":
    num_users, num_items, embedding_size, batch = 32, 48, 32, 8

    key = jax.random.PRNGKey(0)
    k_ue, k_ie, k_ub, k_ib, k_u, k_m = jax.random.split(key, 6)

    # nn.Embedding default init: N(0, 1)
    user_emb = jax.random.normal(k_ue, (num_users, embedding_size), jnp.float32)
    item_emb = jax.random.normal(k_ie, (num_items, embedding_size), jnp.float32)
    user_bias = jax.random.normal(k_ub, (num_users, 1), jnp.float32)
    item_bias = jax.random.normal(k_ib, (num_items, 1), jnp.float32)

    user_idx = jax.random.randint(k_u, (batch,), 0, num_users, jnp.int32)
    movie_idx = jax.random.randint(k_m, (batch,), 0, num_items, jnp.int32)

    # Table folding hoisted out of the per-call path (precompute once, reuse).
    user_tab, item_tab = prepare_mf_tables(user_emb, item_emb, user_bias, item_bias)
    out = mfnet_sigmoid_range_from_tables(user_idx, movie_idx, user_tab, item_tab)
    out = jax.block_until_ready(out)

    ref = _reference(user_idx, movie_idx, user_emb, item_emb, user_bias, item_bias)
    np.testing.assert_allclose(np.asarray(out), np.asarray(ref), rtol=1e-5, atol=1e-5)

    print("KERNEL_OK")
</pallas_src>

<mosaic_0001>
module attributes {stable_mosaic.version = 11 : i64} {
  func.func @_mf_sigmoid_range_kernel(%arg0: i32, %arg1: memref<1x1x128xi32, #tpu.memory_space<vmem>>, %arg2: memref<1x1x128xi32, #tpu.memory_space<vmem>>, %arg3: memref<34x32xf32, #tpu.memory_space<vmem>>, %arg4: memref<34x48xf32, #tpu.memory_space<vmem>>, %arg5: memref<1x1x128xf32, #tpu.memory_space<vmem>>) attributes {dimension_semantics = [#tpu.dimension_semantics<parallel>], iteration_bounds = array<i64: 1>, scalar_prefetch = 0 : i64, scratch_operands = 0 : i64, tpu.core_type = #tpu.core_type<tc>, window_params = [{transform_indices = @transform_0, window_bounds = array<i64: 1, 1, 128>}, {transform_indices = @transform_1, window_bounds = array<i64: 1, 1, 128>}, {pipeline_mode = #tpu.pipeline_mode<synchronous>, transform_indices = @transform_2, window_bounds = array<i64: 34, 32>}, {pipeline_mode = #tpu.pipeline_mode<synchronous>, transform_indices = @transform_3, window_bounds = array<i64: 34, 48>}, {transform_indices = @transform_4, window_bounds = array<i64: 1, 1, 128>}]} {
    %c0 = arith.constant 0 : index
    %c0_0 = arith.constant 0 : index
    %c0_1 = arith.constant 0 : index
    %0 = vector.load %arg1[%c0, %c0_0, %c0_1] : memref<1x1x128xi32, #tpu.memory_space<vmem>>, vector<1x1x128xi32>
    %1 = vector.shape_cast %0 : vector<1x1x128xi32> to vector<1x128xi32>
    %c0_2 = arith.constant 0 : index
    %c0_3 = arith.constant 0 : index
    %c0_4 = arith.constant 0 : index
    %2 = vector.load %arg2[%c0_2, %c0_3, %c0_4] : memref<1x1x128xi32, #tpu.memory_space<vmem>>, vector<1x1x128xi32>
    %3 = vector.shape_cast %2 : vector<1x1x128xi32> to vector<1x128xi32>
    %4 = tpu.iota {dimensions = array<i32: 0>} : vector<32x128xi32>
    %5 = tpu.iota {dimensions = array<i32: 0>} : vector<48x128xi32>
    %6 = vector.broadcast %1 : vector<1x128xi32> to vector<32x128xi32>
    %7 = arith.cmpi eq, %4, %6 : vector<32x128xi32>
    %8 = arith.extui %7 : vector<32x128xi1> to vector<32x128xi32>
    %9 = arith.sitofp %8 : vector<32x128xi32> to vector<32x128xf32>
    %10 = vector.broadcast %3 : vector<1x128xi32> to vector<48x128xi32>
    %11 = arith.cmpi eq, %5, %10 : vector<48x128xi32>
    %12 = arith.extui %11 : vector<48x128xi1> to vector<48x128xi32>
    %13 = arith.sitofp %12 : vector<48x128xi32> to vector<48x128xf32>
    %c0_5 = arith.constant 0 : index
    %c0_6 = arith.constant 0 : index
    %14 = vector.load %arg3[%c0_5, %c0_6] : memref<34x32xf32, #tpu.memory_space<vmem>>, vector<34x32xf32>
    %cst = arith.constant dense<0.000000e+00> : vector<34x128xf32>
    %15 = tpu.matmul %14, %9, %cst {dimension_numbers = #tpu.dot_dimension_numbers<[1], [0], [0], [1], [0, 0, 1, 1], [], []>} : vector<34x32xf32>, vector<32x128xf32>, vector<34x128xf32> -> vector<34x128xf32>
    %c0_7 = arith.constant 0 : index
    %c0_8 = arith.constant 0 : index
    %16 = vector.load %arg4[%c0_7, %c0_8] : memref<34x48xf32, #tpu.memory_space<vmem>>, vector<34x48xf32>
    %cst_9 = arith.constant dense<0.000000e+00> : vector<34x128xf32>
    %17 = tpu.matmul %16, %13, %cst_9 {dimension_numbers = #tpu.dot_dimension_numbers<[1], [0], [0], [1], [0, 0, 1, 1], [], []>} : vector<34x48xf32>, vector<48x128xf32>, vector<34x128xf32> -> vector<34x128xf32>
    %18 = arith.mulf %15, %17 : vector<34x128xf32>
    %cst_10 = arith.constant dense<0.000000e+00> : vector<128xf32>
    %19 = vector.multi_reduction <add>, %18, %cst_10 [0] : vector<34x128xf32> to vector<128xf32>
    %20 = vector.shape_cast %19 : vector<128xf32> to vector<1x128xf32>
    %21 = arith.negf %20 : vector<1x128xf32>
    %22 = math.exp %21 : vector<1x128xf32>
    %cst_11 = arith.constant 1.000000e+00 : f32
    %23 = vector.broadcast %cst_11 : f32 to vector<1x128xf32>
    %24 = arith.addf %23, %22 : vector<1x128xf32>
    %25 = arith.divf %23, %24 : vector<1x128xf32>
    %cst_12 = arith.constant 4.400000e+00 : f32
    %26 = vector.broadcast %cst_12 : f32 to vector<1x128xf32>
    %27 = arith.mulf %25, %26 : vector<1x128xf32>
    %cst_13 = arith.constant 8.000000e-01 : f32
    %28 = vector.broadcast %cst_13 : f32 to vector<1x128xf32>
    %29 = arith.addf %27, %28 : vector<1x128xf32>
    %c0_14 = arith.constant 0 : index
    %c0_15 = arith.constant 0 : index
    %c0_16 = arith.constant 0 : index
    %30 = vector.load %arg5[%c0_14, %c0_15, %c0_16] : memref<1x1x128xf32, #tpu.memory_space<vmem>>, vector<1x1x128xf32>
    %31 = vector.shape_cast %30 : vector<1x1x128xf32> to vector<1x128xf32>
    %32 = vector.shape_cast %29 : vector<1x128xf32> to vector<1x1x128xf32>
    tpu.vector_store %arg5[%c0_14, %c0_15, %c0_16], %32 {strides = array<i32>} : memref<1x1x128xf32, #tpu.memory_space<vmem>>, vector<1x1x128xf32>,
    return
  }
  func.func @transform_0(%arg0: i32) -> (i32, i32, i32) {
    %c0_i32 = arith.constant 0 : i32
    %c0_i32_0 = arith.constant 0 : i32
    %c0_i32_1 = arith.constant 0 : i32
    return %arg0, %c0_i32, %c0_i32_0 : i32, i32, i32
  }
  func.func @transform_1(%arg0: i32) -> (i32, i32, i32) {
    %c0_i32 = arith.constant 0 : i32
    %c0_i32_0 = arith.constant 0 : i32
    %c0_i32_1 = arith.constant 0 : i32
    return %arg0, %c0_i32, %c0_i32_0 : i32, i32, i32
  }
  func.func @transform_2(%arg0: i32) -> (i32, i32) {
    %c0_i32 = arith.constant 0 : i32
    %c0_i32_0 = arith.constant 0 : i32
    %c0_i32_1 = arith.constant 0 : i32
    return %c0_i32, %c0_i32_0 : i32, i32
  }
  func.func @transform_3(%arg0: i32) -> (i32, i32) {
    %c0_i32 = arith.constant 0 : i32
    %c0_i32_0 = arith.constant 0 : i32
    %c0_i32_1 = arith.constant 0 : i32
    return %c0_i32, %c0_i32_0 : i32, i32
  }
  func.func @transform_4(%arg0: i32) -> (i32, i32, i32) {
    %c0_i32 = arith.constant 0 : i32
    %c0_i32_0 = arith.constant 0 : i32
    %c0_i32_1 = arith.constant 0 : i32
    return %arg0, %c0_i32, %c0_i32_0 : i32, i32, i32
  }
}

</mosaic_0001>

<bundles_post_ra>
// kernel: tpu_custom_call.1
= control target key start
LH: loop header
LB: loop body
LE: loop exit
PB: predicated region body
PF: predicated region fallthrough
CT: control target
= control target key end

     0   :  { %v20_v0 = vlaneseq  ;;  %s373_s0 = inlined_call_operand.vmem [shape: s32[1,1,128], index: 0, kind: input, shape index: {}]   ;;  %s374_s1 = inlined_call_operand.vmem [shape: s32[1,1,128], index: 1, kind: input, shape index: {}]   ;;  %s375_s2 = inlined_call_operand.vmem [shape: f32[34,32], index: 2, kind: input, shape index: {}]   ;;  %s376_s3 = inlined_call_operand.vmem [shape: f32[34,48], index: 3, kind: input, shape index: {}]   ;;  %s377_s4 = inlined_call_operand.hbm [shape: f32[1,1,128], index: 4, kind: output, shape index: {}]  }
   0x1   :  { %v263_v2 = vld [vmem:[%s373_s0] ss:$0 sm:$0xff] }
   0x2   :  { %v21_v1 = vshrl.u32 %v20_v0, 7  ;;  %v264_v3 = vld [vmem:[%s374_s1] ss:$0 sm:$0xff] }
   0x4   :  { %v24_v4 = vadd.s32 24, %v21_v1  ;;  %v26_v5 = vadd.s32 40, %v21_v1  ;;  %v23_v6 = vadd.s32 16, %v21_v1  ;;  %v25_v7 = vadd.s32 32, %v21_v1 }
   0x5   :  { %v22_v8 = vadd.s32 8, %v21_v1 }
   0x6   :  { %9 = vsyncpa [#allocation3], 0  ;;  %vm31_vm0 = vcmp.eq.s32.totalorder %v24_v4, %v263_v2  ;;  %vm46_vm1 = vcmp.eq.s32.totalorder %v26_v5, %v264_v3  ;;  %vm30_vm2 = vcmp.eq.s32.totalorder %v23_v6, %v263_v2  ;;  %vm45_vm3 = vcmp.eq.s32.totalorder %v25_v7, %v264_v3  ;;  %v59_v10 = vld [vmem:[%s375_s2] sm:$0xff]  ;;  %v62_v11 = vld [vmem:[%s375_s2 + $0x18] sm:$0xff]  ;;  %s211_s13 = sshll.u32 %s377_s4, 4  ;;  %s212_s13 = int_to_ptr.hbm [resolvable:$true] %s211_s13 }
   0x7   :  { %v295_v9 = vmov 1.0   ;;  %vm29_vm4 = vcmp.eq.s32.totalorder %v22_v8, %v263_v2  ;;  %vm44_vm5 = vcmp.eq.s32.totalorder %v24_v4, %v264_v3  ;;  %vm28_vm6 = vcmp.eq.s32.totalorder %v21_v1, %v263_v2  ;;  %v112_v12 = vld [vmem:[%s376_s3] sm:$0xff]  ;;  %v114_v13 = vld [vmem:[%s376_s3 + $0x10] sm:$0xff]  ;;  %v60_v14 = vld [vmem:[%s375_s2 + $0x8] sm:$0xff] }
   0x8   :  { %230 = vmatpush.msk.msra.mxu0 %vm31_vm0, %v295_v9  ;;  %239 = vmatpush.msk.msra.mxu1 %vm46_vm1, %v295_v9  ;;  %vm43_vm7 = vcmp.eq.s32.totalorder %v23_v6, %v264_v3  ;;  %vm64_vm8 = vcmask 261120   ;;  %vm42_vm9 = vcmp.eq.s32.totalorder %v22_v8, %v264_v3  ;;  %vm41_vm10 = vcmp.eq.s32.totalorder %v21_v1, %v264_v3  ;;  %v63_v15 = vld [vmem:[%s375_s2 + $0x20] sm:$0x3]  ;;  %v113_v16 = vld [vmem:[%s376_s3 + $0x8] sm:$0xff]  ;;  %v115_v17 = vld [vmem:[%s376_s3 + $0x18] sm:$0xff] }
   0x9   :  { %255 = vmatpush.msk.msra.mxu2 %vm46_vm1, %v295_v9  ;;  %251 = vmatpush.msk.msra.mxu3 %vm31_vm0, %v295_v9  ;;  %vm117_vm11 = vcmask 392192   ;;  %v61_v18 = vld [vmem:[%s375_s2 + $0x10] sm:$0xff]  ;;  %v116_v19 = vld [vmem:[%s376_s3 + $0x20] sm:$0x3]  ;;  %vm173_vm12 = vcmask 1041408   ;;  %s296_s2 = smov [#allocation2]  }
   0xa   :  { %231 = vmatpush.msk.msra.mxu0 %vm30_vm2, %v295_v9  ;;  %240 = vmatpush.msk.msra.mxu1 %vm45_vm3, %v295_v9  ;;  %s209_s3 = sshll.u32 %s296_s2, 4  ;;  %s210_s3 = int_to_ptr.vmem [resolvable:$true] %s209_s3 }
   0xb   :  { %256 = vmatpush.msk.msra.mxu2 %vm45_vm3, %v295_v9  ;;  %252 = vmatpush.msk.msra.mxu3 %vm30_vm2, %v295_v9 }
   0xc   :  { %232 = vmatpush.msk.msra.mxu0 %vm29_vm4, %v295_v9  ;;  %241 = vmatpush.msk.msra.mxu1 %vm44_vm5, %v295_v9 }
   0xd   :  { %257 = vmatpush.msk.msra.mxu2 %vm44_vm5, %v295_v9  ;;  %253 = vmatpush.msk.msra.mxu3 %vm29_vm4, %v295_v9 }
   0xe   :  { %233 = vmatpush.msk.msra.mxu0 %vm28_vm6, %v295_v9  ;;  %242 = vmatpush.msk.msra.mxu1 %vm43_vm7, %v295_v9 }
   0xf   :  { %258 = vmatpush.msk.msra.mxu2 %vm43_vm7, %v295_v9  ;;  %234 = vmatmul.msk.f32.vlgmr.msra.gmra.mxu0 %vm64_vm8, %v59_v10 }
  0x10   :  { %243 = vmatpush.msk.msra.mxu1 %vm42_vm9, %v295_v9  ;;  %254 = vmatpush.msk.msra.mxu3 %vm28_vm6, %v295_v9 }
  0x11   :  { %259 = vmatpush.msk.msra.mxu2 %vm42_vm9, %v295_v9  ;;  %237 = vmatmul.msk.f32.vlgmr.msra.gmra.mxu3 %vm64_vm8, %v62_v11 }
  0x12   :  { %244 = vmatpush.msk.msra.mxu1 %vm41_vm10, %v295_v9 }
  0x13   :  { %260 = vmatpush.msk.msra.mxu2 %vm41_vm10, %v295_v9  ;;  %245 = vmatmul.msk.f32.vlgmr.msra.gmra.mxu1 %vm117_vm11, %v112_v12 }
  0x14   :  { %247 = vmatmul.msk.f32.vlgmr.msra.gmra.mxu2 %vm117_vm11, %v114_v13 }
  0x17   :  { %235 = vmatmul.msk.f32.gmra.mxu0 %vm64_vm8, %v60_v14 }
  0x19   :  { %238 = vmatmul.msk.f32.gmra.mxu3 %vm64_vm8, %v63_v15 }
  0x1b   :  { %246 = vmatmul.msk.f32.gmra.mxu1 %vm117_vm11, %v113_v16 }
  0x1c   :  { %248 = vmatmul.msk.f32.gmra.mxu2 %vm117_vm11, %v115_v17 }
  0x1f   :  { %236 = vmatmul.msk.f32.gmra.mxu0 %vm64_vm8, %v61_v18 }
  0x24   :  { %249 = vmatmul.msk.f32.gmra.mxu2 %vm117_vm11, %v116_v19 }
  0x8c   :  { %v97_v20 = vpop.f32.mrf.mxu0 }
  0x90   :  { %v150_v21 = vpop.f32.mrf.mxu1 }
  0x91   :  { %v165_v29 = vmul.f32 %v150_v21, %v97_v20 }
  0x94   :  { %v100_v22 = vpop.f32.mrf.mxu0  ;;  %v106_v24 = vpop.f32.mrf.mxu3 }
  0x97   :  { %v156_v23 = vpop.f32.mrf.mxu2 }
  0x98   :  { %v153_v25 = vpop.f32.mrf.mxu1 }
  0x99   :  { %v166_v27 = vmul.f32 %v153_v25, %v100_v22 }
  0x9b   :  { %v170_v31 = vadd.f32 %v166_v27, %v165_v29 }
  0x9c   :  { %v103_v26 = vpop.f32.mrf.mxu0  ;;  %v109_v34 = vpop.f32.mrf.mxu3 }
  0x9d   :  { %v167_v30 = vmul.f32 %v156_v23, %v103_v26 }
  0x9f   :  { %v159_v28 = vpop.f32.mrf.mxu2  ;;  %v171_v32 = vadd.f32 %v170_v31, %v167_v30 }
  0xa0   :  { %v168_v33 = vmul.f32 %v159_v28, %v106_v24 }
  0xa2   :  { %v172_v37 = vadd.f32 %v171_v32, %v168_v33 }
  0xa7   :  { %v162_v35 = vpop.f32.mrf.mxu2 }
  0xa8   :  { %v169_v36 = vmul.f32 %v162_v35, %v109_v34 }
  0xaa   :  { %v174_v38 = vsel %vm173_vm12, %v169_v36, 0.0 }
  0xab   :  { %v175_v39 = vadd.f32 %v174_v38, %v172_v37 }
  0xad   :  { %v176_v40 = vrot.slane %v175_v39, 4 }
  0xaf   :  { %v177_v41 = vadd.f32 %v176_v40, %v175_v39 }
  0xb1   :  { %v178_v42 = vrot.slane %v177_v41, 2 }
  0xb3   :  { %v179_v43 = vadd.f32 %v178_v42, %v177_v41 }
  0xb5   :  { %v180_v44 = vrot.slane %v179_v43, 1 }
  0xb7   :  { %v181_v45 = vadd.f32 %v180_v44, %v179_v43 }
  0xb9   :  { %v250_v46 = vmul.f32 -1.442695, %v181_v45 }
  0xbb   :  { %265 = vpow2.f32 %v250_v46 }
  0xc1   :  { %v266_v47 = vpop.eup %265 }
  0xc2   :  { %v185_v48 = vadd.f32 1.0, %v266_v47 }
  0xc4   :  { %267 = vrcp.f32 %v185_v48  ;;  %v197_v52 = vand.u32 2147483648, %v185_v48  ;;  %v195_v54 = vand.u32 2147483647, %v185_v48  ;;  %vm191_vm14 = vweird.f32 %v185_v48 }
  0xc6   :  { %v198_v56 = vor.u32 1.1754944e-38, %v197_v52  ;;  %vm196_vm0 = vcmp.eq.f32.partialorder %v195_v54, 8.507059e+37 }
  0xca   :  { %v268_v49 = vpop.eup %267 }
  0xcb   :  { %v187_v50 = vmul.f32 %v268_v49, %v185_v48  ;;  %vm192_vm13 = vweird.f32 %v268_v49 }
  0xcc   :  { %vm193_vm15 = vmor %vm191_vm14, %vm192_vm13 }
  0xcd   :  { %v188_v51 = vsub.f32 1.0, %v187_v50 }
  0xcf   :  { %v189_v53 = vmul.f32 %v268_v49, %v188_v51 }
  0xd1   :  { %v190_v55 = vadd.f32 %v268_v49, %v189_v53 }
  0xd3   :  { %v194_v57 = vsel %vm193_vm15, %v268_v49, %v190_v55 }
  0xd4   :  { %v199_v58 = vsel %vm196_vm0, %v198_v56, %v194_v57 }
  0xd5   :  { %v201_v59 = vmul.f32 4.4, %v199_v58 }
  0xd7   :  { %v202_v60 = vadd.f32 0.8, %v201_v59 }
  0xd9   :  { %203 = vst [vmem:[#allocation2] sm:$0x1] %v202_v60 }
  0xda   :  { %214 = dma.vmem_to_hbm [thread:$0]  %s210_s3, 16, %s212_s13, [#allocation3]  }
  0xdb   :  { %293 = dma.done.wait [#allocation3], 16  }
  0xdc   :  { %294 = vsyncadd [#allocation3], 4294967280 }
  0xdd   :  { %219 = vsyncpa [#allocation3], 1 }

</bundles_post_ra>
